<compile_context>
chip_gen: v5e
topology: v5e:2x2
jax: 0.10.0
libtpu: 0.0.40
codegen_flags: <defaults>
</compile_context>

<pallas_src>
import functools

import jax
import jax.numpy as jnp
from jax.experimental import pallas as pl
from jax.experimental.pallas import tpu as pltpu


def _dwconv_kernel(x_ref, w_ref, b_ref, m_ref, o_ref, xpad_ref,
                   *, K, W, HW, pad, Q):
    # x_ref   : (1, C, HW)          VMEM -- one image, all channels, flat spatial
    # w_ref   : (K*K, C, 1)         VMEM -- per-tap, per-channel weights
    # b_ref   : (C, 1)              VMEM -- per-channel bias
    # m_ref   : (K, 1, HW)          VMEM -- per-kw lane-validity masks (f32 0/1)
    # o_ref   : (1, C, HW)          VMEM -- dense stride-1 "anchor" output
    # xpad_ref: (C, >= Q + HW + PR) VMEM -- zero-halo staging buffer (scratch)
    C = x_ref.shape[1]

    # Stage the input into the zero-padded halo buffer.  Zero it every step:
    # with a 'parallel' grid a TensorCore may never execute step 0, so the
    # halo cannot rely on a one-time init.
    xpad_ref[...] = jnp.zeros_like(xpad_ref)
    xpad_ref[:, Q:Q + HW] = x_ref[0].astype(jnp.float32)

    acc = jnp.zeros((C, HW), jnp.float32)
    for kh in range(K):
        di = kh - pad
        for kw in range(K):
            dj = kw - pad
            s = di * W + dj                          # uniform flat-spatial shift
            patch = xpad_ref[:, Q + s:Q + s + HW]    # (C, HW) static slice
            t = kh * K + kw
            # (C,HW) * (1,HW) sublane-broadcast * (C,1) lane-broadcast
            acc = acc + patch * m_ref[kw] * w_ref[t]
    o_ref[0] = (acc + b_ref[...]).astype(o_ref.dtype)


def depthwise_conv2d(x, weight, bias, *, stride=1, padding=0):
    """Depthwise conv (groups == C).  x: (N, C, H, W); weight: (C, 1, K, K);
    bias: (C,).  Returns (N, C, H_out, W_out)."""
    N, C, H, W = x.shape
    K = weight.shape[-1]
    H_out = (H + 2 * padding - K) // stride + 1
    W_out = (W + 2 * padding - K) // stride + 1
    # The kernel evaluates the conv at every input anchor; this covers all
    # output anchors as long as padding <= (K-1)//2 (standard configs).
    assert 2 * padding <= K - 1, "padding > (K-1)//2 not supported"
    HW = H * W

    x_flat = x.reshape(N, C, HW)
    w_taps = jnp.transpose(weight.reshape(C, K * K), (1, 0)) \
                .reshape(K * K, C, 1).astype(jnp.float32)
    b_col = bias.reshape(C, 1).astype(jnp.float32)

    # Per-kw lane-validity mask over the flattened spatial axis: kills
    # cross-row (and out-of-image) contamination of the flat shift.
    col = jnp.arange(HW, dtype=jnp.int32) % W
    masks = jnp.stack(
        [((col + (kw - padding) >= 0) & (col + (kw - padding) < W))
         .astype(jnp.float32) for kw in range(K)],
        axis=0).reshape(K, 1, HW)

    # Halo geometry: most negative shift = -padding*(W+1); most positive
    # shift = (K-1-padding)*(W+1).  Keep the staging offset lane-aligned.
    q_raw = padding * (W + 1)
    Q = ((q_raw + 127) // 128) * 128
    P_R = max(0, (K - 1 - padding) * (W + 1))
    scratch_w = ((Q + HW + P_R + 127) // 128) * 128

    kernel = functools.partial(_dwconv_kernel, K=K, W=W, HW=HW,
                               pad=padding, Q=Q)

    # TODO(synk): for very large H*W, tile the spatial axis (with a K-1 row
    # halo) and set vmem_limit_bytes so blocks stay inside v7x's 64 MiB VMEM.
    y_full = pl.pallas_call(
        kernel,
        out_shape=jax.ShapeDtypeStruct((N, C, HW), x.dtype),
        grid_spec=pltpu.PrefetchScalarGridSpec(
            num_scalar_prefetch=0,
            grid=(N,),
            in_specs=[
                pl.BlockSpec((1, C, HW), lambda n: (n, 0, 0)),
                pl.BlockSpec((K * K, C, 1), lambda n: (0, 0, 0)),
                pl.BlockSpec((C, 1), lambda n: (0, 0)),
                pl.BlockSpec((K, 1, HW), lambda n: (0, 0, 0)),
            ],
            out_specs=pl.BlockSpec((1, C, HW), lambda n: (n, 0, 0)),
            scratch_shapes=[pltpu.VMEM((C, scratch_w), jnp.float32)],
        ),
        compiler_params=pltpu.CompilerParams(
            dimension_semantics=("parallel",)),
    )(x_flat, w_taps, b_col, masks)

    y = y_full.reshape(N, C, H, W)
    # Striding / cropping is a cheap wrapper-side subsample of the dense
    # result (avoids lane-strided loads inside the kernel).
    return y[:, :, ::stride, ::stride][:, :, :H_out, :W_out]


if __name__ == "__main__":
    # Module config: DepthwiseConv2d(in_channels=4, kernel_size=3, stride=1, padding=1)
    N, C, H, W = 2, 4, 16, 16
    K = 3

    key = jax.random.PRNGKey(0)
    kx, kw, kb = jax.random.split(key, 3)

    x = jax.random.normal(kx, (N, C, H, W), dtype=jnp.float32)
    # Deterministic init mimicking PyTorch's uniform(-bound, bound), fan_in = 1*K*K.
    fan_in = K * K
    bound = 1.0 / (fan_in ** 0.5)
    weight = jax.random.uniform(kw, (C, 1, K, K), jnp.float32, -bound, bound)
    bias = jax.random.uniform(kb, (C,), jnp.float32, -bound, bound)

    def ref_conv(xx, ww, bb, stride, pad):
        return jax.lax.conv_general_dilated(
            xx, ww, window_strides=(stride, stride),
            padding=[(pad, pad), (pad, pad)],
            dimension_numbers=("NCHW", "OIHW", "NCHW"),
            feature_group_count=C,
        ) + bb[None, :, None, None]

    # Primary config (the module under test): stride=1, padding=1.
    out = jax.block_until_ready(depthwise_conv2d(x, weight, bias, stride=1, padding=1))
    ref = ref_conv(x, weight, bias, 1, 1)
    assert out.shape == ref.shape
    assert jnp.allclose(out, ref, atol=1e-5, rtol=1e-5)

    # Extra check requested in review: stride=2 path (wrapper-side subsample,
    # no strided in-kernel loads).
    out2 = jax.block_until_ready(depthwise_conv2d(x, weight, bias, stride=2, padding=1))
    ref2 = ref_conv(x, weight, bias, 2, 1)
    assert out2.shape == ref2.shape
    assert jnp.allclose(out2, ref2, atol=1e-5, rtol=1e-5)

    print("KERNEL_OK")
</pallas_src>

<mosaic_0001>
module attributes {stable_mosaic.version = 11 : i64} {
  func.func @_dwconv_kernel(%arg0: i32, %arg1: memref<1x4x256xf32, #tpu.memory_space<vmem>>, %arg2: memref<9x4x1xf32, #tpu.memory_space<vmem>>, %arg3: memref<4x1xf32, #tpu.memory_space<vmem>>, %arg4: memref<3x1x256xf32, #tpu.memory_space<vmem>>, %arg5: memref<1x4x256xf32, #tpu.memory_space<vmem>>, %arg6: memref<4x512xf32, #tpu.memory_space<vmem>>) attributes {dimension_semantics = [#tpu.dimension_semantics<parallel>], iteration_bounds = array<i64: 2>, scalar_prefetch = 0 : i64, scratch_operands = 1 : i64, tpu.core_type = #tpu.core_type<tc>, window_params = [{transform_indices = @transform_0, window_bounds = array<i64: 1, 4, 256>}, {pipeline_mode = #tpu.pipeline_mode<synchronous>, transform_indices = @transform_1, window_bounds = array<i64: 9, 4, 1>}, {pipeline_mode = #tpu.pipeline_mode<synchronous>, transform_indices = @transform_2, window_bounds = array<i64: 4, 1>}, {pipeline_mode = #tpu.pipeline_mode<synchronous>, transform_indices = @transform_3, window_bounds = array<i64: 3, 1, 256>}, {transform_indices = @transform_4, window_bounds = array<i64: 1, 4, 256>}]} {
    %cst = arith.constant 0.000000e+00 : f32
    %0 = vector.broadcast %cst : f32 to vector<4x512xf32>
    %c0 = arith.constant 0 : index
    %c0_0 = arith.constant 0 : index
    %1 = vector.load %arg6[%c0, %c0_0] : memref<4x512xf32, #tpu.memory_space<vmem>>, vector<4x512xf32>
    tpu.vector_store %arg6[%c0, %c0_0], %0 {strides = array<i32>} : memref<4x512xf32, #tpu.memory_space<vmem>>, vector<4x512xf32>,
    %c0_1 = arith.constant 0 : index
    %c0_2 = arith.constant 0 : index
    %c0_3 = arith.constant 0 : index
    %2 = vector.load %arg1[%c0_1, %c0_2, %c0_3] : memref<1x4x256xf32, #tpu.memory_space<vmem>>, vector<1x4x256xf32>
    %3 = vector.shape_cast %2 : vector<1x4x256xf32> to vector<4x256xf32>
    %c0_4 = arith.constant 0 : index
    %c128 = arith.constant 128 : index
    %4 = vector.load %arg6[%c0_4, %c128] : memref<4x512xf32, #tpu.memory_space<vmem>>, vector<4x256xf32>
    tpu.vector_store %arg6[%c0_4, %c128], %3 {strides = array<i32>} : memref<4x512xf32, #tpu.memory_space<vmem>>, vector<4x256xf32>,
    %cst_5 = arith.constant 0.000000e+00 : f32
    %5 = vector.broadcast %cst_5 : f32 to vector<4x256xf32>
    %c0_6 = arith.constant 0 : index
    %c111 = arith.constant 111 : index
    %6 = vector.load %arg6[%c0_6, %c111] : memref<4x512xf32, #tpu.memory_space<vmem>>, vector<4x256xf32>
    %c0_7 = arith.constant 0 : index
    %c0_8 = arith.constant 0 : index
    %c0_9 = arith.constant 0 : index
    %7 = vector.load %arg4[%c0_7, %c0_8, %c0_9] : memref<3x1x256xf32, #tpu.memory_space<vmem>>, vector<1x1x256xf32>
    %8 = vector.shape_cast %7 : vector<1x1x256xf32> to vector<1x256xf32>
    %9 = vector.broadcast %8 : vector<1x256xf32> to vector<4x256xf32>
    %10 = arith.mulf %6, %9 : vector<4x256xf32>
    %c0_10 = arith.constant 0 : index
    %c0_11 = arith.constant 0 : index
    %c0_12 = arith.constant 0 : index
    %11 = vector.load %arg2[%c0_10, %c0_11, %c0_12] : memref<9x4x1xf32, #tpu.memory_space<vmem>>, vector<1x4x1xf32>
    %12 = vector.shape_cast %11 : vector<1x4x1xf32> to vector<4x1xf32>
    %13 = vector.broadcast %12 : vector<4x1xf32> to vector<4x256xf32>
    %14 = arith.mulf %10, %13 : vector<4x256xf32>
    %15 = arith.addf %5, %14 : vector<4x256xf32>
    %c0_13 = arith.constant 0 : index
    %c112 = arith.constant 112 : index
    %16 = vector.load %arg6[%c0_13, %c112] : memref<4x512xf32, #tpu.memory_space<vmem>>, vector<4x256xf32>
    %c1 = arith.constant 1 : index
    %c0_14 = arith.constant 0 : index
    %c0_15 = arith.constant 0 : index
    %17 = vector.load %arg4[%c1, %c0_14, %c0_15] : memref<3x1x256xf32, #tpu.memory_space<vmem>>, vector<1x1x256xf32>
    %18 = vector.shape_cast %17 : vector<1x1x256xf32> to vector<1x256xf32>
    %19 = vector.broadcast %18 : vector<1x256xf32> to vector<4x256xf32>
    %20 = arith.mulf %16, %19 : vector<4x256xf32>
    %c1_16 = arith.constant 1 : index
    %c0_17 = arith.constant 0 : index
    %c0_18 = arith.constant 0 : index
    %21 = vector.load %arg2[%c1_16, %c0_17, %c0_18] : memref<9x4x1xf32, #tpu.memory_space<vmem>>, vector<1x4x1xf32>
    %22 = vector.shape_cast %21 : vector<1x4x1xf32> to vector<4x1xf32>
    %23 = vector.broadcast %22 : vector<4x1xf32> to vector<4x256xf32>
    %24 = arith.mulf %20, %23 : vector<4x256xf32>
    %25 = arith.addf %15, %24 : vector<4x256xf32>
    %c0_19 = arith.constant 0 : index
    %c113 = arith.constant 113 : index
    %26 = vector.load %arg6[%c0_19, %c113] : memref<4x512xf32, #tpu.memory_space<vmem>>, vector<4x256xf32>
    %c2 = arith.constant 2 : index
    %c0_20 = arith.constant 0 : index
    %c0_21 = arith.constant 0 : index
    %27 = vector.load %arg4[%c2, %c0_20, %c0_21] : memref<3x1x256xf32, #tpu.memory_space<vmem>>, vector<1x1x256xf32>
    %28 = vector.shape_cast %27 : vector<1x1x256xf32> to vector<1x256xf32>
    %29 = vector.broadcast %28 : vector<1x256xf32> to vector<4x256xf32>
    %30 = arith.mulf %26, %29 : vector<4x256xf32>
    %c2_22 = arith.constant 2 : index
    %c0_23 = arith.constant 0 : index
    %c0_24 = arith.constant 0 : index
    %31 = vector.load %arg2[%c2_22, %c0_23, %c0_24] : memref<9x4x1xf32, #tpu.memory_space<vmem>>, vector<1x4x1xf32>
    %32 = vector.shape_cast %31 : vector<1x4x1xf32> to vector<4x1xf32>
    %33 = vector.broadcast %32 : vector<4x1xf32> to vector<4x256xf32>
    %34 = arith.mulf %30, %33 : vector<4x256xf32>
    %35 = arith.addf %25, %34 : vector<4x256xf32>
    %c0_25 = arith.constant 0 : index
    %c127 = arith.constant 127 : index
    %36 = vector.load %arg6[%c0_25, %c127] : memref<4x512xf32, #tpu.memory_space<vmem>>, vector<4x256xf32>
    %c0_26 = arith.constant 0 : index
    %c0_27 = arith.constant 0 : index
    %c0_28 = arith.constant 0 : index
    %37 = vector.load %arg4[%c0_26, %c0_27, %c0_28] : memref<3x1x256xf32, #tpu.memory_space<vmem>>, vector<1x1x256xf32>
    %38 = vector.shape_cast %37 : vector<1x1x256xf32> to vector<1x256xf32>
    %39 = vector.broadcast %38 : vector<1x256xf32> to vector<4x256xf32>
    %40 = arith.mulf %36, %39 : vector<4x256xf32>
    %c3 = arith.constant 3 : index
    %c0_29 = arith.constant 0 : index
    %c0_30 = arith.constant 0 : index
    %41 = vector.load %arg2[%c3, %c0_29, %c0_30] : memref<9x4x1xf32, #tpu.memory_space<vmem>>, vector<1x4x1xf32>
    %42 = vector.shape_cast %41 : vector<1x4x1xf32> to vector<4x1xf32>
    %43 = vector.broadcast %42 : vector<4x1xf32> to vector<4x256xf32>
    %44 = arith.mulf %40, %43 : vector<4x256xf32>
    %45 = arith.addf %35, %44 : vector<4x256xf32>
    %c0_31 = arith.constant 0 : index
    %c128_32 = arith.constant 128 : index
    %46 = vector.load %arg6[%c0_31, %c128_32] : memref<4x512xf32, #tpu.memory_space<vmem>>, vector<4x256xf32>
    %c1_33 = arith.constant 1 : index
    %c0_34 = arith.constant 0 : index
    %c0_35 = arith.constant 0 : index
    %47 = vector.load %arg4[%c1_33, %c0_34, %c0_35] : memref<3x1x256xf32, #tpu.memory_space<vmem>>, vector<1x1x256xf32>
    %48 = vector.shape_cast %47 : vector<1x1x256xf32> to vector<1x256xf32>
    %49 = vector.broadcast %48 : vector<1x256xf32> to vector<4x256xf32>
    %50 = arith.mulf %46, %49 : vector<4x256xf32>
    %c4 = arith.constant 4 : index
    %c0_36 = arith.constant 0 : index
    %c0_37 = arith.constant 0 : index
    %51 = vector.load %arg2[%c4, %c0_36, %c0_37] : memref<9x4x1xf32, #tpu.memory_space<vmem>>, vector<1x4x1xf32>
    %52 = vector.shape_cast %51 : vector<1x4x1xf32> to vector<4x1xf32>
    %53 = vector.broadcast %52 : vector<4x1xf32> to vector<4x256xf32>
    %54 = arith.mulf %50, %53 : vector<4x256xf32>
    %55 = arith.addf %45, %54 : vector<4x256xf32>
    %c0_38 = arith.constant 0 : index
    %c129 = arith.constant 129 : index
    %56 = vector.load %arg6[%c0_38, %c129] : memref<4x512xf32, #tpu.memory_space<vmem>>, vector<4x256xf32>
    %c2_39 = arith.constant 2 : index
    %c0_40 = arith.constant 0 : index
    %c0_41 = arith.constant 0 : index
    %57 = vector.load %arg4[%c2_39, %c0_40, %c0_41] : memref<3x1x256xf32, #tpu.memory_space<vmem>>, vector<1x1x256xf32>
    %58 = vector.shape_cast %57 : vector<1x1x256xf32> to vector<1x256xf32>
    %59 = vector.broadcast %58 : vector<1x256xf32> to vector<4x256xf32>
    %60 = arith.mulf %56, %59 : vector<4x256xf32>
    %c5 = arith.constant 5 : index
    %c0_42 = arith.constant 0 : index
    %c0_43 = arith.constant 0 : index
    %61 = vector.load %arg2[%c5, %c0_42, %c0_43] : memref<9x4x1xf32, #tpu.memory_space<vmem>>, vector<1x4x1xf32>
    %62 = vector.shape_cast %61 : vector<1x4x1xf32> to vector<4x1xf32>
    %63 = vector.broadcast %62 : vector<4x1xf32> to vector<4x256xf32>
    %64 = arith.mulf %60, %63 : vector<4x256xf32>
    %65 = arith.addf %55, %64 : vector<4x256xf32>
    %c0_44 = arith.constant 0 : index
    %c143 = arith.constant 143 : index
    %66 = vector.load %arg6[%c0_44, %c143] : memref<4x512xf32, #tpu.memory_space<vmem>>, vector<4x256xf32>
    %c0_45 = arith.constant 0 : index
    %c0_46 = arith.constant 0 : index
    %c0_47 = arith.constant 0 : index
    %67 = vector.load %arg4[%c0_45, %c0_46, %c0_47] : memref<3x1x256xf32, #tpu.memory_space<vmem>>, vector<1x1x256xf32>
    %68 = vector.shape_cast %67 : vector<1x1x256xf32> to vector<1x256xf32>
    %69 = vector.broadcast %68 : vector<1x256xf32> to vector<4x256xf32>
    %70 = arith.mulf %66, %69 : vector<4x256xf32>
    %c6 = arith.constant 6 : index
    %c0_48 = arith.constant 0 : index
    %c0_49 = arith.constant 0 : index
    %71 = vector.load %arg2[%c6, %c0_48, %c0_49] : memref<9x4x1xf32, #tpu.memory_space<vmem>>, vector<1x4x1xf32>
    %72 = vector.shape_cast %71 : vector<1x4x1xf32> to vector<4x1xf32>
    %73 = vector.broadcast %72 : vector<4x1xf32> to vector<4x256xf32>
    %74 = arith.mulf %70, %73 : vector<4x256xf32>
    %75 = arith.addf %65, %74 : vector<4x256xf32>
    %c0_50 = arith.constant 0 : index
    %c144 = arith.constant 144 : index
    %76 = vector.load %arg6[%c0_50, %c144] : memref<4x512xf32, #tpu.memory_space<vmem>>, vector<4x256xf32>
    %c1_51 = arith.constant 1 : index
    %c0_52 = arith.constant 0 : index
    %c0_53 = arith.constant 0 : index
    %77 = vector.load %arg4[%c1_51, %c0_52, %c0_53] : memref<3x1x256xf32, #tpu.memory_space<vmem>>, vector<1x1x256xf32>
    %78 = vector.shape_cast %77 : vector<1x1x256xf32> to vector<1x256xf32>
    %79 = vector.broadcast %78 : vector<1x256xf32> to vector<4x256xf32>
    %80 = arith.mulf %76, %79 : vector<4x256xf32>
    %c7 = arith.constant 7 : index
    %c0_54 = arith.constant 0 : index
    %c0_55 = arith.constant 0 : index
    %81 = vector.load %arg2[%c7, %c0_54, %c0_55] : memref<9x4x1xf32, #tpu.memory_space<vmem>>, vector<1x4x1xf32>
    %82 = vector.shape_cast %81 : vector<1x4x1xf32> to vector<4x1xf32>
    %83 = vector.broadcast %82 : vector<4x1xf32> to vector<4x256xf32>
    %84 = arith.mulf %80, %83 : vector<4x256xf32>
    %85 = arith.addf %75, %84 : vector<4x256xf32>
    %c0_56 = arith.constant 0 : index
    %c145 = arith.constant 145 : index
    %86 = vector.load %arg6[%c0_56, %c145] : memref<4x512xf32, #tpu.memory_space<vmem>>, vector<4x256xf32>
    %c2_57 = arith.constant 2 : index
    %c0_58 = arith.constant 0 : index
    %c0_59 = arith.constant 0 : index
    %87 = vector.load %arg4[%c2_57, %c0_58, %c0_59] : memref<3x1x256xf32, #tpu.memory_space<vmem>>, vector<1x1x256xf32>
    %88 = vector.shape_cast %87 : vector<1x1x256xf32> to vector<1x256xf32>
    %89 = vector.broadcast %88 : vector<1x256xf32> to vector<4x256xf32>
    %90 = arith.mulf %86, %89 : vector<4x256xf32>
    %c8 = arith.constant 8 : index
    %c0_60 = arith.constant 0 : index
    %c0_61 = arith.constant 0 : index
    %91 = vector.load %arg2[%c8, %c0_60, %c0_61] : memref<9x4x1xf32, #tpu.memory_space<vmem>>, vector<1x4x1xf32>
    %92 = vector.shape_cast %91 : vector<1x4x1xf32> to vector<4x1xf32>
    %93 = vector.broadcast %92 : vector<4x1xf32> to vector<4x256xf32>
    %94 = arith.mulf %90, %93 : vector<4x256xf32>
    %95 = arith.addf %85, %94 : vector<4x256xf32>
    %c0_62 = arith.constant 0 : index
    %c0_63 = arith.constant 0 : index
    %96 = vector.load %arg3[%c0_62, %c0_63] : memref<4x1xf32, #tpu.memory_space<vmem>>, vector<4x1xf32>
    %97 = vector.broadcast %96 : vector<4x1xf32> to vector<4x256xf32>
    %98 = arith.addf %95, %97 : vector<4x256xf32>
    %c0_64 = arith.constant 0 : index
    %c0_65 = arith.constant 0 : index
    %c0_66 = arith.constant 0 : index
    %99 = vector.load %arg5[%c0_64, %c0_65, %c0_66] : memref<1x4x256xf32, #tpu.memory_space<vmem>>, vector<1x4x256xf32>
    %100 = vector.shape_cast %99 : vector<1x4x256xf32> to vector<4x256xf32>
    %101 = vector.shape_cast %98 : vector<4x256xf32> to vector<1x4x256xf32>
    tpu.vector_store %arg5[%c0_64, %c0_65, %c0_66], %101 {strides = array<i32>} : memref<1x4x256xf32, #tpu.memory_space<vmem>>, vector<1x4x256xf32>,
    return
  }
  func.func @transform_0(%arg0: i32) -> (i32, i32, i32) {
    %c0_i32 = arith.constant 0 : i32
    %c0_i32_0 = arith.constant 0 : i32
    %c0_i32_1 = arith.constant 0 : i32
    return %arg0, %c0_i32, %c0_i32_0 : i32, i32, i32
  }
  func.func @transform_1(%arg0: i32) -> (i32, i32, i32) {
    %c0_i32 = arith.constant 0 : i32
    %c0_i32_0 = arith.constant 0 : i32
    %c0_i32_1 = arith.constant 0 : i32
    %c0_i32_2 = arith.constant 0 : i32
    return %c0_i32, %c0_i32_0, %c0_i32_1 : i32, i32, i32
  }
  func.func @transform_2(%arg0: i32) -> (i32, i32) {
    %c0_i32 = arith.constant 0 : i32
    %c0_i32_0 = arith.constant 0 : i32
    %c0_i32_1 = arith.constant 0 : i32
    return %c0_i32, %c0_i32_0 : i32, i32
  }
  func.func @transform_3(%arg0: i32) -> (i32, i32, i32) {
    %c0_i32 = arith.constant 0 : i32
    %c0_i32_0 = arith.constant 0 : i32
    %c0_i32_1 = arith.constant 0 : i32
    %c0_i32_2 = arith.constant 0 : i32
    return %c0_i32, %c0_i32_0, %c0_i32_1 : i32, i32, i32
  }
  func.func @transform_4(%arg0: i32) -> (i32, i32, i32) {
    %c0_i32 = arith.constant 0 : i32
    %c0_i32_0 = arith.constant 0 : i32
    %c0_i32_1 = arith.constant 0 : i32
    return %arg0, %c0_i32, %c0_i32_0 : i32, i32, i32
  }
}

</mosaic_0001>

<bundles_post_ra>
// kernel: tpu_custom_call.1
= control target key start
LH: loop header
LB: loop body
LE: loop exit
PB: predicated region body
PF: predicated region fallthrough
CT: control target
= control target key end

     0   :  { %9 = vsyncpa [#allocation4], 0  ;;  %s1019_s0 = inlined_call_operand.vmem [shape: f32[2,4,256], index: 0, kind: input, shape index: {}]   ;;  %s1020_s1 = inlined_call_operand.vmem [shape: f32[9,4,1], index: 1, kind: input, shape index: {}]   ;;  %s1021_s2 = inlined_call_operand.vmem [shape: f32[4,1], index: 2, kind: input, shape index: {}]   ;;  %s1022_s3 = inlined_call_operand.vmem [shape: f32[3,1,256], index: 3, kind: input, shape index: {}]   ;;  %s1023_s4 = inlined_call_operand.hbm [shape: f32[2,4,256], index: 4, kind: output, shape index: {}]  }
   0x1   :  { %11 = vsyncpa [#allocation4 + $0x1], 0  ;;  %s812_s15 = smov 0   ;;  %s814_s16 = smov 0  }
   0x2   :  { %s816_s17 = smov 0   ;;  %s818_s18 = smov 0  }
   0x3 LB: > { %s833_s19 = sadd.s32 4294967295, %s769_s18   ;;  %s625_s20 = sadd.s32 4294967294, %s769_s18   ;;  %s769_s18 = sphi %s818_s18, %s1029_s18   ;;  %s765_s17 = sphi %s816_s17, %s1028_s17   ;;  %s761_s16 = sphi %s814_s16, %s1027_s16   ;;  %s757_s15 = sphi %s812_s15, %s1026_s15  }
   0x4   : > { %s837_s21 = sadd.s32 1, %s769_s18   ;;  %s113_s22 = sadd.s32 1, %s765_s17 }
   0x5   : > { %s110_s23 = ssub.s32 %s769_s18, %s837_s21  ;;  %p123_p0 = scmp.ne.s32.totalorder %s765_s17, %s761_s16 }
   0x6   : > { %p111_p1 = scmp.eq.s32.totalorder %s110_s23, 0  ;;  %p124_p2 = scmp.eq.s32.totalorder %s833_s19, 1 }
   0x7   : > { %p129_p3 = scmp.ne.s32.totalorder %s761_s16, %s757_s15  ;;  %p130_p4 = scmp.eq.s32.totalorder %s625_s20, 1 }
   0x8   : > { %s848_s24 = scalar_select %p111_p1, %s765_s17, %s113_s22  }
   0x9   : > { %p850_p5 = por %p124_p2, %p123_p0  ;;  %p854_p6 = por %p130_p4, %p129_p3 }
   0xa   : > { %p628_p7 = scmp.ge.s32.totalorder %s769_s18, 1  ;;  %p165_p8 = scmp.lt.s32.totalorder %s769_s18, 3 }
   0xc   : > { %p166_p9 = pnand %p628_p7, %p165_p8 }
   0xd   : > { %p191_p10 = scmp.lt.s32.totalorder (!%p166_p9), %s833_s19, 1  ;;  %s773_s22 = smov (!%p166_p9), 112  }
   0xe   : > { %169 = sbr.rel (%p166_p9) target bundleno = 437 (0x1b5), region = 36  ;;  %s774_s28 = smov (!%p166_p9), 127  }
   0xf   : > { %s775_s29 = smov (!%p166_p9), 113   ;;  %s776_s6 = smov (!%p166_p9), 15  }
  0x10   : > { %s778_s10 = smov (!%p166_p9), 16   ;;  %s780_s5 = smov (!%p166_p9), 111  }
  0x11   : > { %s784_s8 = smov (!%p166_p9), 110   ;;  %s188_s11 = sand.u32 (!%p166_p9), 1, %s761_s16  }
  0x12   : > { %s648_s13 = sshll.u32 (!%p166_p9), %s833_s19, 3 }
  0x13   : > { %v635_v0 = vld [vmem:[%s1020_s1 + $0x8] sm:$0xf]  ;;  %v633_v1 = vld [vmem:[%s1020_s1 + $0x4] sm:$0xf]  ;;  %v771_v2 = vmov 0   ;;  %vm207_vm0 = vcmask 1043456   ;;  %s561_s27 = scalar_lea.hbm %s1023_s4, %s648_s13 }
  0x14   : > { %705 = vset.pattern.permute.xlu2 %v771_v2  ;;  %704 = vset.pattern.permute.xlu1 %v771_v2  ;;  %v632_v3 = vld [vmem:[%s1022_s3 + $0x2] sm:$0x3]  ;;  %v772_v6 = vmov 0.0   ;;  %s192_s7 = scalar_select %p191_p10, %s833_s19, 1  ;;  %v202_v7 = vld [vmem:[%s1022_s3] sm:$0x3] }
  0x15   : > { %296 = vperm.xlu2 %705, %v635_v0   ;;  %252 = vperm.xlu1 %704, %v633_v1   ;;  %v235_v4 = vperm.slane %v632_v3, 0  ;;  %v236_v5 = vperm.slane %v632_v3, 1  ;;  %196 = vst [vmem:[#allocation2] sm:$0xff] %v772_v6  ;;  %v634_v8 = vld [vmem:[%s1022_s3 + $0x4] sm:$0x3]  ;;  %v204_v10 = vperm.slane %v202_v7, 0 }
  0x16   : > { %197 = vst [vmem:[#allocation2 + $0x8] sm:$0xff] %v772_v6  ;;  %706 = vset.pattern.permute.xlu0 %v771_v2  ;;  %v205_v11 = vperm.slane %v202_v7, 1  ;;  %s647_s12 = sshll.u32 %s192_s7, 3  ;;  %v280_v12 = vperm.slane %v634_v8, 1  ;;  %v636_v16 = vld [vmem:[%s1020_s1 + $0xc] sm:$0xf] }
  0x17   : > { %v237_v9 = vrot.slane %v236_v5, 4  ;;  %s195_s20 = scalar_lea.vmem %s1019_s0, %s647_s12  ;;  %v279_v18 = vperm.slane %v634_v8, 0  ;;  %v637_v21 = vld [vmem:[%s1020_s1 + $0x10] sm:$0xf]  ;;  %s777_s7 = smov 1   ;;  %vm270_vm1 = vcmask 1039360  }
  0x18   : > { %v206_v14 = vrot.slane %v205_v11, 4  ;;  %v885_v15 = vld [vmem:[%s195_s20] sm:$0xff]  ;;  %v281_v19 = vrot.slane %v280_v12, 4  ;;  %v639_v22 = vld [vmem:[%s1020_s1 + $0x18] sm:$0xf]  ;;  %s779_s20 = smov 17  }
  0x19   : > { %v878_v13 = vsel %vm207_vm0, %v235_v4, %v237_v9  ;;  %199 = vst [vmem:[#allocation2 + $0x4] sm:$0xff] %v885_v15  ;;  %v638_v23 = vld [vmem:[%s1020_s1 + $0x14] sm:$0xf]  ;;  %v640_v24 = vld [vmem:[%s1020_s1 + $0x1c] sm:$0xf]  ;;  %vm384_vm2 = vcmask 7168  }
  0x1a   : > { %239 = vrot.lane.b32.xlu0 %v878_v13, %s773_s22  ;;  %v208_v17 = vsel %vm207_vm0, %v204_v10, %v206_v14  ;;  %v282_v20 = vsel %vm207_vm0, %v279_v18, %v281_v19  ;;  %v641_v25 = vld [vmem:[%s1020_s1 + $0x20] sm:$0xf]  ;;  %v781_v29 = vmov 839922192   ;;  %v357_v51 = vmul.f32 %v878_v13, %v885_v15  ;;  %s629_s12 = sshll.u32 %s188_s11, 3  ;;  %s550_s19 = scalar_lea.sflag [#allocation4], %s188_s11 }
  0x1b   : > { %v218_v26 = vld [vmem:[%s1020_s1] sm:$0xf]  ;;  %v224_v30 = vunpack.c.l.s4 %v781_v29  ;;  %vm242_vm3 = vcmask 916480   ;;  %vm286_vm4 = vcmask 924672   ;;  %vm492_vm5 = vcmask 138240  }
  0x1c   : > { %vm456_vm6 = vcmask 130048   ;;  %vm420_vm7 = vcmask 121856   ;;  %vm212_vm8 = vcmask 908288   ;;  %vm314_vm9 = vcmask 1031168  }
  0x1d   : > { %332 = vperm.xlu2 %705, %v636_v16   ;;  %320 = vrot.lane.b32.xlu1 %v208_v17, %s774_s28  ;;  %v917_v33 = vunpack.c.0.s8 %v224_v30  ;;  %v925_v44 = vld [vmem:[#allocation2 + $0xc] sm:$0xf]  ;;  %vm410_vm10 = vcmask 900096   ;;  %vm446_vm11 = vcmask 785408   ;;  %vm482_vm12 = vcmask 777216  }
  0x1e   : > { %vm518_vm13 = vcmask 769024  }
  0x20   : > { %v919_v35 = vld [vmem:[#allocation2 + $0x8] sm:$0xf]  ;;  %v942_v58 = vld [vmem:[#allocation2] sm:$0xff] }
  0x22   : > { %283 = vrot.lane.b32.xlu0 %v282_v20, %s775_s29  ;;  %s190_s29 = scalar_lea.vmem [#allocation3], %s629_s12 }
  0x23   : > { %s563_s30 = sshll.u32 %s190_s29, 4  ;;  %s564_s30 = int_to_ptr.vmem [resolvable:$true] %s563_s30 }
  0x25   : > { %417 = vrot.lane.b32.xlu2 %v208_v17, %s776_s6  ;;  %362 = vperm.xlu1 %704, %v637_v21   ;;  %s782_s6 = smov 96  }
  0x2a   : > { %381 = vrot.lane.b32.xlu0 %v282_v20, %s777_s7  ;;  %s783_s7 = smov 126  }
  0x2d   : > { %430 = vperm.xlu2 %705, %v639_v22   ;;  %453 = vrot.lane.b32.xlu1 %v878_v13, %s778_s10 }
  0x32   : > { %394 = vperm.xlu0 %706, %v638_v23  }
  0x35   : > { %466 = vperm.xlu2 %705, %v640_v24   ;;  %489 = vrot.lane.b32.xlu1 %v282_v20, %s779_s20 }
  0x3a   : > { %502 = vperm.xlu0 %706, %v641_v25  }
  0x3d   : > { %221 = vperm.xlu2 %705, %v218_v26   ;;  %209 = vrot.lane.b32.xlu1 %v208_v17, %s780_s5 }
  0x6f   : > { %v297_v27 = vpop.permute.xlu2 %296 }
  0x70   : > { %v301_v0 = vperm.slane %v297_v27, %v917_v33 }
  0x77   : > { %v333_v28 = vpop.permute.xlu2 %332 }
  0x78   : > { %v337_v43 = vperm.slane %v333_v28, %v917_v33 }
  0x7f   : > { %v915_v32 = vpop.permute.xlu2 %417 }
  0x80   : > { %v419_v41 = vrot.slane %v915_v32, 4 }
  0x82   : > { %v425_v49 = vmul.f32 %v419_v41, %v925_v44  ;;  %v421_v30 = vsel %vm420_vm7, %v419_v41, %v915_v32  ;;  %v525_v32 = vld [vmem:[%s1021_s2] sm:$0xf] }
  0x87   : > { %v253_v31 = vpop.permute.xlu1 %252  ;;  %v431_v46 = vpop.permute.xlu2 %430 }
  0x88   : > { %v257_v37 = vperm.slane %v253_v31, %v917_v33  ;;  %v933_v50 = vperm.slane %v431_v46, %v917_v33 }
  0x8a   : > { %v438_v54 = vmul.f32 %v933_v50, %v425_v49 }
  0x8c   : > { %v240_v34 = vpop.permute.xlu0 %239 }
  0x8d   : > { %v241_v36 = vrot.slane %v240_v34, 4 }
  0x8f   : > { %v247_v38 = vmul.f32 %v241_v36, %v919_v35  ;;  %v321_v39 = vpop.permute.xlu1 %320  ;;  %v243_v4 = vsel %vm242_vm3, %v241_v36, %v240_v34  ;;  %v467_v22 = vpop.permute.xlu2 %466  ;;  %v424_v34 = vmul.f32 %v421_v30, %v885_v15 }
  0x90   : > { %v322_v40 = vrot.slane %v321_v39, 4  ;;  %v246_v9 = vmul.f32 %v243_v4, %v942_v58  ;;  %v471_v27 = vperm.slane %v467_v22, %v917_v33 }
  0x91   : > { %v260_v42 = vmul.f32 %v257_v37, %v247_v38 }
  0x92   : > { %v327_v45 = vmul.f32 %v322_v40, %v919_v35  ;;  %v323_v55 = vsel %vm270_vm1, %v322_v40, %v321_v39  ;;  %v259_v18 = vmul.f32 %v257_v37, %v246_v9  ;;  %v437_v37 = vmul.f32 %v933_v50, %v424_v34 }
  0x93   : > { %265 = vrot.lane.b32.xlu1 %v260_v42, %s774_s28  ;;  %v326_v60 = vmul.f32 %v323_v55, %v942_v58 }
  0x94   : > { %v284_v47 = vpop.permute.xlu0 %283  ;;  %v340_v48 = vmul.f32 %v337_v43, %v327_v45 }
  0x95   : > { %v285_v56 = vrot.slane %v284_v47, 4  ;;  %v339_v2 = vmul.f32 %v337_v43, %v326_v60 }
  0x96   : > { %345 = vrot.lane.b32.xlu2 %v340_v48, %s773_s22 }
  0x97   : > { %v363_v52 = vpop.permute.xlu1 %362  ;;  %v291_v62 = vmul.f32 %v285_v56, %v919_v35  ;;  %v287_v13 = vsel %vm286_vm4, %v285_v56, %v284_v47  ;;  %v222_v41 = vpop.permute.xlu2 %221 }
  0x98   : > { %v367_v53 = vperm.slane %v363_v52, %v917_v33  ;;  %v290_v19 = vmul.f32 %v287_v13, %v942_v58  ;;  %v226_v55 = vperm.slane %v222_v41, %v917_v33 }
  0x99   : > { %v304_v3 = vmul.f32 %v301_v0, %v291_v62 }
  0x9a   : > { %v369_v57 = vmul.f32 %v367_v53, %v357_v51  ;;  %v303_v26 = vmul.f32 %v301_v0, %v290_v19 }
  0x9b   : > { %443 = vrot.lane.b32.xlu1 %v438_v54, %s782_s6 }
  0x9c   : > { %v382_v59 = vpop.permute.xlu0 %381  ;;  %371 = vrot.lane.b32.xlu0 %v369_v57, %s780_s5  ;;  %s565_s5 = sshll.u32 %s561_s27, 4  ;;  %s566_s5 = int_to_ptr.hbm [resolvable:$true] %s565_s5 }
  0x9d   : > { %v383_v61 = vrot.slane %v382_v59, 4 }
  0x9f   : > { %v454_v63 = vpop.permute.xlu1 %453  ;;  %v385_v1 = vsel %vm384_vm2, %v383_v61, %v382_v59  ;;  %v389_v6 = vmul.f32 %v383_v61, %v925_v44 }
  0xa0   : > { %v388_v5 = vmul.f32 %v385_v1, %v885_v15  ;;  %v455_v16 = vrot.slane %v454_v63, 4 }
  0xa2   : > { %v461_v24 = vmul.f32 %v455_v16, %v925_v44  ;;  %v457_v28 = vsel %vm456_vm6, %v455_v16, %v454_v63 }
  0xa3   : > { %343 = vrot.lane.b32.xlu1 %v339_v2, %s773_s22  ;;  %v460_v31 = vmul.f32 %v457_v28, %v885_v15  ;;  %s785_s22 = smov 94  }
  0xa4   : > { %v395_v7 = vpop.permute.xlu0 %394  ;;  %309 = vrot.lane.b32.xlu0 %v304_v3, %s783_s7  ;;  %v474_v29 = vmul.f32 %v471_v27, %v461_v24 }
  0xa5   : > { %v399_v8 = vperm.slane %v395_v7, %v917_v33  ;;  %v473_v36 = vmul.f32 %v471_v27, %v460_v31 }
  0xa7   : > { %v401_v10 = vmul.f32 %v399_v8, %v388_v5  ;;  %v402_v11 = vmul.f32 %v399_v8, %v389_v6  ;;  %v490_v12 = vpop.permute.xlu1 %489 }
  0xa8   : > { %v491_v14 = vrot.slane %v490_v12, 4 }
  0xa9   : > { %407 = vrot.lane.b32.xlu2 %v402_v11, %s784_s8 }
  0xaa   : > { %v493_v17 = vsel %vm492_vm5, %v491_v14, %v490_v12  ;;  %v497_v38 = vmul.f32 %v491_v14, %v925_v44 }
  0xab   : > { %v496_v20 = vmul.f32 %v493_v17, %v885_v15  ;;  %405 = vrot.lane.b32.xlu1 %v401_v10, %s784_s8 }
  0xac   : > { %263 = vrot.lane.b32.xlu0 %v259_v18, %s774_s28  ;;  %v503_v21 = vpop.permute.xlu0 %502  ;;  %s786_s28 = smov 95  }
  0xad   : > { %v507_v23 = vperm.slane %v503_v21, %v917_v33 }
  0xaf   : > { %v509_v25 = vmul.f32 %v507_v23, %v496_v20  ;;  %v510_v39 = vmul.f32 %v507_v23, %v497_v38  ;;  %v210_v40 = vpop.permute.xlu1 %209 }
  0xb0   : > { %v211_v47 = vrot.slane %v210_v40, 4 }
  0xb1   : > { %307 = vrot.lane.b32.xlu2 %v303_v26, %s783_s7 }
  0xb2   : > { %v213_v44 = vsel %vm212_vm8, %v211_v47, %v210_v40  ;;  %v217_v53 = vmul.f32 %v211_v47, %v919_v35 }
  0xb3   : > { %513 = vrot.lane.b32.xlu1 %v509_v25, %s785_s22  ;;  %v216_v51 = vmul.f32 %v213_v44, %v942_v58 }
  0xb4   : > { %479 = vrot.lane.b32.xlu0 %v474_v29, %s786_s28  ;;  %v229_v1 = vmul.f32 %v226_v55, %v217_v53 }
  0xb5   : > { %v228_v62 = vmul.f32 %v226_v55, %v216_v51 }
  0xb9   : > { %477 = vrot.lane.b32.xlu2 %v473_v36, %s786_s28 }
  0xbc   : > { %441 = vrot.lane.b32.xlu0 %v437_v37, %s782_s6 }
  0xc1   : > { %515 = vrot.lane.b32.xlu2 %v510_v39, %s785_s22  ;;  %s727_s22 = scalar_lea.hbm %s1023_s4, 16 }
  0xc4   : > { %528 = vperm.xlu0 %706, %v525_v32  }
  0xf0   : > { %v346_v43 = vpop.permute.xlu2 %345 }
  0xf1   : > { %v348_v0 = vrot.slane %v346_v43, 4 }
 0x103   : > { %v408_v46 = vpop.permute.xlu2 %407 }
 0x105   : > { %v266_v42 = vpop.permute.xlu1 %265 }
 0x106   : > { %v268_v56 = vrot.slane %v266_v42, 4  ;;  %v275_v3 = vadd.f32 %v266_v42, %v229_v1 }
 0x10b   : > { %v308_v50 = vpop.permute.xlu2 %307 }
 0x10c   : > { %v311_v57 = vrot.slane %v308_v50, 4 }
 0x10d   : > { %v444_v45 = vpop.permute.xlu1 %443 }
 0x10e   : > { %v372_v15 = vpop.permute.xlu0 %371 }
 0x10f   : > { %v373_v9 = vrot.slane %v372_v15, 4 }
 0x111   : > { %v374_v16 = vsel %vm212_vm8, %v373_v9, %v372_v15 }
 0x113   : > { %v478_v13 = vpop.permute.xlu2 %477 }
 0x114   : > { %v481_v22 = vrot.slane %v478_v13, 4 }
 0x115   : > { %v344_v49 = vpop.permute.xlu1 %343 }
 0x116   : > { %v310_v48 = vpop.permute.xlu0 %309  ;;  %v347_v60 = vrot.slane %v344_v49, 4  ;;  %v483_v34 = vsel %vm482_vm12, %v481_v22, %v478_v13 }
 0x117   : > { %v312_v52 = vrot.slane %v310_v48, 4  ;;  %v319_v7 = vadd.f32 %v310_v48, %v275_v3 }
 0x118   : > { %v349_v35 = vsel %vm207_vm0, %v347_v60, %v348_v0 }
 0x119   : > { %v313_v61 = vsel %vm207_vm0, %v311_v57, %v312_v52  ;;  %v350_v10 = vsel %vm242_vm3, %v344_v49, %v349_v35  ;;  %v354_v14 = vadd.f32 %v346_v43, %v319_v7 }
 0x11a   : > { %v315_v5 = vsel %vm314_vm9, %v308_v50, %v313_v61 }
 0x11b   : > { %v378_v19 = vadd.f32 %v373_v9, %v354_v14  ;;  %v516_v37 = vpop.permute.xlu2 %515 }
 0x11d   : > { %v406_v4 = vpop.permute.xlu1 %405 }
 0x11e   : > { %v264_v54 = vpop.permute.xlu0 %263  ;;  %v409_v12 = vrot.slane %v406_v4, 4 }
 0x11f   : > { %v267_v59 = vrot.slane %v264_v54, 4 }
 0x120   : > { %v412_v18 = vsel %vm410_vm10, %v409_v12, %v408_v46  ;;  %v411_v23 = vsel %vm410_vm10, %v409_v12, %v406_v4 }
 0x121   : > { %v269_v63 = vsel %vm207_vm0, %v267_v59, %v268_v56  ;;  %v416_v25 = vadd.f32 %v412_v18, %v378_v19 }
 0x122   : > { %v271_v58 = vsel %vm270_vm1, %v264_v54, %v269_v63 }
 0x123   : > { %v274_v2 = vadd.f32 %v271_v58, %v228_v62 }
 0x125   : > { %v318_v6 = vadd.f32 %v315_v5, %v274_v2  ;;  %v514_v20 = vpop.permute.xlu1 %513 }
 0x126   : > { %v480_v8 = vpop.permute.xlu0 %479  ;;  %v517_v27 = vrot.slane %v514_v20, 4 }
 0x127   : > { %v353_v11 = vadd.f32 %v350_v10, %v318_v6  ;;  %v484_v36 = vsel %vm482_vm12, %v481_v22, %v480_v8 }
 0x128   : > { %v519_v32 = vsel %vm518_vm13, %v517_v27, %v514_v20  ;;  %v520_v40 = vsel %vm518_vm13, %v517_v27, %v516_v37 }
 0x129   : > { %v377_v17 = vadd.f32 %v374_v16, %v353_v11 }
 0x12b   : > { %v415_v26 = vadd.f32 %v411_v23, %v377_v17 }
 0x12e   : > { %v442_v21 = vpop.permute.xlu0 %441 }
 0x12f   : > { %v445_v24 = vrot.slane %v442_v21, 4 }
 0x131   : > { %v447_v28 = vsel %vm446_vm11, %v445_v24, %v442_v21  ;;  %v448_v29 = vsel %vm446_vm11, %v445_v24, %v444_v45 }
 0x132   : > { %v451_v30 = vadd.f32 %v447_v28, %v415_v26  ;;  %v452_v31 = vadd.f32 %v448_v29, %v416_v25 }
 0x134   : > { %v487_v38 = vadd.f32 %v483_v34, %v451_v30  ;;  %v488_v39 = vadd.f32 %v484_v36, %v452_v31 }
 0x136   : > { %v524_v41 = vadd.f32 %v520_v40, %v488_v39  ;;  %v529_v42 = vpop.permute.xlu0 %528  ;;  %v523_v43 = vadd.f32 %v519_v32, %v487_v38 }
 0x137   : > { %v533_v15 = vperm.slane %v529_v42, %v917_v33 }
 0x139   : > { %v535_v46 = vadd.f32 %v533_v15, %v523_v43  ;;  %v536_v47 = vadd.f32 %v533_v15, %v524_v41 }
 0x13b   : > { %541 = vrot.lane.b32.xlu2 %v536_v47, %s779_s20  ;;  %539 = vrot.lane.b32.xlu1 %v535_v46, %s779_s20  ;;  %s721_s20 = sshra.s32 %s566_s5, 4  ;;  %s722_s20 = int_to_ptr.hbm [resolvable:$true] %s721_s20 }
 0x13c   : > { %s723_s6 = scalar_lea.hbm %s722_s20, 8  ;;  %p728_p0 = scmp.lt.s32.totalorder %s722_s20, %s1023_s4 }
 0x13d   : > { %p724_p11 = scmp.ne.s32.totalorder %s722_s20, %s723_s6  ;;  %p729_p1 = scmp.lt.s32.totalorder %s727_s22, %s723_s6 }
 0x13f   : > { %p725_p12 = pnand %p724_p11, %p850_p5  ;;  %p730_p2 = por %p729_p1, %p728_p0 }
 0x141   : > { %p726_p13 = pneg %p725_p12 }
 0x143   : > { %p731_p3 = pnand %p730_p2, %p726_p13 }
 0x195   : > { %v542_v45 = vpop.permute.xlu2 %541 }
 0x196   : > { %v544_v33 = vrot.slane %v542_v45, 4 }
 0x1ad   : > { %v540_v48 = vpop.permute.xlu1 %539 }
 0x1ae   : > { %v543_v44 = vrot.slane %v540_v48, 4 }
 0x1b0   : > { %v545_v49 = vsel %vm207_vm0, %v543_v44, %v544_v33 }
 0x1b1   : > { %v546_v50 = vsel %vm492_vm5, %v540_v48, %v545_v49 }
 0x1b2   : > { %548 = vst [vmem:[%s190_s29] sm:$0xff] %v546_v50 }
 0x1b3   : > { %734 = shalt.err (!%p731_p3)
}
 0x1b4   : > { %649 = dma.vmem_to_hbm [thread:$0]  (%p850_p5), %s564_s30, 128, %s566_s5, %s550_s19  }
 0x1b5 PF: > { %p655_p4 = scmp.ge.s32.totalorder %s769_s18, 2  ;;  %s577_s10 = sand.u32 1, %s757_s15  }
 0x1b6   : > { %s578_s11 = scalar_lea.sflag [#allocation4], %s577_s10 }
 0x1b7   : > { %p652_p7 = pnand %p655_p4, %p854_p6 }
 0x1b9   : > { %p653_p8 = pneg %p652_p7 }
 0x1bb   : > { %752 = dma.done.wait (%p653_p8), %s578_s11, 128  }
 0x1bc   : > { %754 = vsyncadd (%p653_p8), %s578_s11, 4294967168  ;;  %p14_p9 = scmp.ge.s32.totalorder %s837_s21, 4   ;;  %s1026_s15 = smov %s761_s16 }
 0x1bd   : > { %s1027_s16 = smov %s765_s17  ;;  %s1028_s17 = smov %s848_s24 }
 0x1be   : > { %s1029_s18 = smov %s837_s21  ;;  %16 = sbr.rel (!%p14_p9) target bundleno = 3 (0x3), region = 81 }
 0x1c3   :  { %584 = vsyncpa [#allocation4], 1 }
 0x1c4   :  { %586 = vsyncpa [#allocation4 + $0x1], 1 }

</bundles_post_ra>
